<compile_context>
chip_gen: v7x
topology: tpu7x:2x2x1
jax: 0.10.0
libtpu: 0.0.40
codegen_flags: <defaults>
</compile_context>

<pallas_src>
import jax
import jax.numpy as jnp
from jax.experimental import pallas as pl
from jax.experimental.pallas import tpu as pltpu

IN_DIM, H1, H2, OUT_DIM = 28 * 28, 128, 64, 10


def mlp_kernel(x_ref, w1_ref, b1_ref, w2_ref, b2_ref, w3_ref, b3_ref, o_ref):
    # Cast the streamed f32 x tile to bf16 on the VPU (hides under the x DMA);
    # fc1 runs bf16 x bf16 on the MXU with f32 accumulation.
    x_bf = x_ref[...].astype(jnp.bfloat16)
    h1 = jnp.dot(x_bf, w1_ref[...], preferred_element_type=jnp.float32)
    h1 = jnp.maximum(h1 + b1_ref[...], 0.0)
    # fc2 / fc3 are tiny; keep them f32 with VMEM-resident weights.
    h2 = jnp.dot(h1, w2_ref[...], preferred_element_type=jnp.float32)
    h2 = jnp.maximum(h2 + b2_ref[...], 0.0)
    o_ref[...] = (
        jnp.dot(h2, w3_ref[...], preferred_element_type=jnp.float32) + b3_ref[...]
    )


def _round_up(n, m):
    return ((n + m - 1) // m) * m


def simple_nn_forward(x_nchw, params, *, block_b=2048):
    """x_nchw: (B, 1, 28, 28) float32.  Returns logits (B, 10) float32."""
    B = x_nchw.shape[0]
    x = x_nchw.reshape(B, IN_DIM).astype(jnp.float32)  # torch .view(-1, 784)
    w1, b1, w2, b2, w3, b3 = params

    # One-time tiny cast (~200 KB); the dominant x stream stays f32 in HBM.
    w1_bf16 = w1.astype(jnp.bfloat16)

    # Batch tile: multiple of 8 rows (sublane), capped at block_b.
    TB = min(block_b, _round_up(max(B, 1), 8))
    if B > 8:
        # Keep >= 2 grid steps so both v7x TensorCores get work under
        # dimension_semantics=("parallel",). Cheap on single-TC chips.
        TB = min(TB, _round_up(pl.cdiv(B, 2), 8))
    TB = max(TB, 8)

    grid = (pl.cdiv(B, TB),)

    # Explicit VMEM budget: double-buffered f32 x tile + output tile + weights,
    # plus h1/h2 intermediates, plus headroom.  Clamped to stay well inside
    # v7x's 64 MiB physical VMEM while raising v5e's 16 MiB scoped default.
    x_tile = TB * IN_DIM * 4
    out_tile = TB * OUT_DIM * 4
    weights = IN_DIM * H1 * 2 + (H1 * H2 + H2 * OUT_DIM + H1 + H2 + OUT_DIM) * 4
    intermediates = TB * (H1 + H2) * 4
    vmem_limit = min(
        max(2 * (x_tile + out_tile + weights) + intermediates + (4 << 20), 32 << 20),
        48 << 20,
    )

    flops = 2 * B * (IN_DIM * H1 + H1 * H2 + H2 * OUT_DIM)
    bytes_accessed = (
        B * IN_DIM * 4                        # x stream (f32, read once)
        + IN_DIM * H1 * 2                     # fc1 weight (bf16)
        + (H1 * H2 + H2 * OUT_DIM) * 4        # fc2 / fc3 weights (f32)
        + (H1 + H2 + OUT_DIM) * 4             # biases (f32)
        + B * OUT_DIM * 4                     # logits out (f32)
    )

    out = pl.pallas_call(
        mlp_kernel,
        out_shape=jax.ShapeDtypeStruct((B, OUT_DIM), jnp.float32),
        grid=grid,
        in_specs=[
            pl.BlockSpec((TB, IN_DIM), lambda i: (i, 0)),    # x: streamed tiles
            pl.BlockSpec((IN_DIM, H1), lambda i: (0, 0)),    # w1 (bf16): resident
            pl.BlockSpec((1, H1), lambda i: (0, 0)),         # b1: resident
            pl.BlockSpec((H1, H2), lambda i: (0, 0)),        # w2: resident
            pl.BlockSpec((1, H2), lambda i: (0, 0)),         # b2: resident
            pl.BlockSpec((H2, OUT_DIM), lambda i: (0, 0)),   # w3: resident
            pl.BlockSpec((1, OUT_DIM), lambda i: (0, 0)),    # b3: resident
        ],
        out_specs=pl.BlockSpec((TB, OUT_DIM), lambda i: (i, 0)),
        compiler_params=pltpu.CompilerParams(
            dimension_semantics=("parallel",),  # independent batch tiles (megacore)
            vmem_limit_bytes=vmem_limit,
        ),
        cost_estimate=pl.CostEstimate(
            flops=flops, transcendentals=0, bytes_accessed=bytes_accessed
        ),
    )(x, w1_bf16, b1, w2, b2, w3, b3)

    return out


def init_params(key):
    """Deterministic init mimicking torch.nn.Linear default:
    U(-1/sqrt(fan_in), 1/sqrt(fan_in)) for both weight and bias.
    Weights stored as (in_features, out_features)."""
    dims = [(IN_DIM, H1), (H1, H2), (H2, OUT_DIM)]
    params = []
    for (fan_in, fan_out) in dims:
        key, kw, kb = jax.random.split(key, 3)
        bound = 1.0 / (fan_in ** 0.5)
        w = jax.random.uniform(kw, (fan_in, fan_out), jnp.float32, -bound, bound)
        b = jax.random.uniform(kb, (1, fan_out), jnp.float32, -bound, bound)
        params.extend([w, b])
    return tuple(params)


def _reference(x_nchw, params):
    """Pure f32 forward, matching the PyTorch module exactly."""
    w1, b1, w2, b2, w3, b3 = params
    B = x_nchw.shape[0]
    xf = x_nchw.reshape(B, IN_DIM).astype(jnp.float32)
    h = jnp.maximum(xf @ w1 + b1, 0.0)
    h = jnp.maximum(h @ w2 + b2, 0.0)
    return h @ w3 + b3


if __name__ == "__main__":
    key = jax.random.PRNGKey(0)
    key, kx1, kx2 = jax.random.split(key, 3)
    params = init_params(key)

    # Documented tolerance vs. the pure-f32 reference: fc1 runs in bf16 on the
    # MXU (f32 accumulation), giving ~1e-3 absolute deviation on O(1) logits.
    ATOL = RTOL = 1e-2

    # Small MNIST-like batch: (B=2, C=1, H=28, W=28), NCHW like PyTorch.
    x_small = jax.random.normal(kx1, (2, 1, 28, 28), dtype=jnp.float32)
    logits_small = simple_nn_forward(x_small, params)
    jax.block_until_ready(logits_small)
    assert logits_small.shape == (2, OUT_DIM)
    assert jnp.allclose(logits_small, _reference(x_small, params),
                        atol=ATOL, rtol=RTOL)

    # Larger batch with a tiny block size to exercise the batch grid
    # (grid=(4,)) and the ragged last block (30 rows, TB=8).
    x_big = jax.random.normal(kx2, (30, 1, 28, 28), dtype=jnp.float32)
    logits_big = simple_nn_forward(x_big, params, block_b=8)
    jax.block_until_ready(logits_big)
    assert logits_big.shape == (30, OUT_DIM)
    assert jnp.allclose(logits_big, _reference(x_big, params),
                        atol=ATOL, rtol=RTOL)

    print("KERNEL_OK")
</pallas_src>

<mosaic_0001>
module attributes {stable_mosaic.version = 11 : i64} {
  func.func @mlp_kernel(%arg0: i32, %arg1: memref<8x784xf32, #tpu.memory_space<vmem>>, %arg2: memref<784x128xbf16, #tpu.memory_space<vmem>>, %arg3: memref<1x128xf32, #tpu.memory_space<vmem>>, %arg4: memref<128x64xf32, #tpu.memory_space<vmem>>, %arg5: memref<1x64xf32, #tpu.memory_space<vmem>>, %arg6: memref<64x10xf32, #tpu.memory_space<vmem>>, %arg7: memref<1x10xf32, #tpu.memory_space<vmem>>, %arg8: memref<8x10xf32, #tpu.memory_space<vmem>>) attributes {dimension_semantics = [#tpu.dimension_semantics<parallel>], iteration_bounds = array<i64: 1>, scalar_prefetch = 0 : i64, scratch_operands = 0 : i64, tpu.core_type = #tpu.core_type<tc>, window_params = [{transform_indices = @transform_0, window_bounds = array<i64: 8, 784>}, {pipeline_mode = #tpu.pipeline_mode<synchronous>, transform_indices = @transform_1, window_bounds = array<i64: 784, 128>}, {pipeline_mode = #tpu.pipeline_mode<synchronous>, transform_indices = @transform_2, window_bounds = array<i64: 1, 128>}, {pipeline_mode = #tpu.pipeline_mode<synchronous>, transform_indices = @transform_3, window_bounds = array<i64: 128, 64>}, {pipeline_mode = #tpu.pipeline_mode<synchronous>, transform_indices = @transform_4, window_bounds = array<i64: 1, 64>}, {pipeline_mode = #tpu.pipeline_mode<synchronous>, transform_indices = @transform_5, window_bounds = array<i64: 64, 10>}, {pipeline_mode = #tpu.pipeline_mode<synchronous>, transform_indices = @transform_6, window_bounds = array<i64: 1, 10>}, {transform_indices = @transform_7, window_bounds = array<i64: 8, 10>}]} {
    %c0 = arith.constant 0 : index
    %c0_0 = arith.constant 0 : index
    %0 = vector.load %arg1[%c0, %c0_0] : memref<8x784xf32, #tpu.memory_space<vmem>>, vector<8x784xf32>
    %1 = arith.truncf %0 : vector<8x784xf32> to vector<8x784xbf16>
    %c0_1 = arith.constant 0 : index
    %c0_2 = arith.constant 0 : index
    %2 = vector.load %arg2[%c0_1, %c0_2] : memref<784x128xbf16, #tpu.memory_space<vmem>>, vector<784x128xbf16>
    %cst = arith.constant dense<0.000000e+00> : vector<8x128xf32>
    %3 = tpu.matmul %1, %2, %cst {dimension_numbers = #tpu.dot_dimension_numbers<[1], [0], [0], [1], [0, 0, 1, 1], [], []>} : vector<8x784xbf16>, vector<784x128xbf16>, vector<8x128xf32> -> vector<8x128xf32>
    %c0_3 = arith.constant 0 : index
    %c0_4 = arith.constant 0 : index
    %4 = vector.load %arg3[%c0_3, %c0_4] : memref<1x128xf32, #tpu.memory_space<vmem>>, vector<1x128xf32>
    %5 = vector.broadcast %4 : vector<1x128xf32> to vector<8x128xf32>
    %6 = arith.addf %3, %5 : vector<8x128xf32>
    %cst_5 = arith.constant 0.000000e+00 : f32
    %7 = vector.broadcast %cst_5 : f32 to vector<8x128xf32>
    %8 = arith.maximumf %6, %7 : vector<8x128xf32>
    %c0_6 = arith.constant 0 : index
    %c0_7 = arith.constant 0 : index
    %9 = vector.load %arg4[%c0_6, %c0_7] : memref<128x64xf32, #tpu.memory_space<vmem>>, vector<128x64xf32>
    %cst_8 = arith.constant dense<0.000000e+00> : vector<8x64xf32>
    %10 = tpu.matmul %8, %9, %cst_8 {dimension_numbers = #tpu.dot_dimension_numbers<[1], [0], [0], [1], [0, 0, 1, 1], [], []>} : vector<8x128xf32>, vector<128x64xf32>, vector<8x64xf32> -> vector<8x64xf32>
    %c0_9 = arith.constant 0 : index
    %c0_10 = arith.constant 0 : index
    %11 = vector.load %arg5[%c0_9, %c0_10] : memref<1x64xf32, #tpu.memory_space<vmem>>, vector<1x64xf32>
    %12 = vector.broadcast %11 : vector<1x64xf32> to vector<8x64xf32>
    %13 = arith.addf %10, %12 : vector<8x64xf32>
    %cst_11 = arith.constant 0.000000e+00 : f32
    %14 = vector.broadcast %cst_11 : f32 to vector<8x64xf32>
    %15 = arith.maximumf %13, %14 : vector<8x64xf32>
    %c0_12 = arith.constant 0 : index
    %c0_13 = arith.constant 0 : index
    %16 = vector.load %arg6[%c0_12, %c0_13] : memref<64x10xf32, #tpu.memory_space<vmem>>, vector<64x10xf32>
    %cst_14 = arith.constant dense<0.000000e+00> : vector<8x10xf32>
    %17 = tpu.matmul %15, %16, %cst_14 {dimension_numbers = #tpu.dot_dimension_numbers<[1], [0], [0], [1], [0, 0, 1, 1], [], []>} : vector<8x64xf32>, vector<64x10xf32>, vector<8x10xf32> -> vector<8x10xf32>
    %c0_15 = arith.constant 0 : index
    %c0_16 = arith.constant 0 : index
    %18 = vector.load %arg7[%c0_15, %c0_16] : memref<1x10xf32, #tpu.memory_space<vmem>>, vector<1x10xf32>
    %19 = vector.broadcast %18 : vector<1x10xf32> to vector<8x10xf32>
    %20 = arith.addf %17, %19 : vector<8x10xf32>
    %c0_17 = arith.constant 0 : index
    %c0_18 = arith.constant 0 : index
    %21 = vector.load %arg8[%c0_17, %c0_18] : memref<8x10xf32, #tpu.memory_space<vmem>>, vector<8x10xf32>
    tpu.vector_store %arg8[%c0_17, %c0_18], %20 {strides = array<i32>} : memref<8x10xf32, #tpu.memory_space<vmem>>, vector<8x10xf32>,
    return
  }
  func.func @transform_0(%arg0: i32) -> (i32, i32) {
    %c0_i32 = arith.constant 0 : i32
    %c0_i32_0 = arith.constant 0 : i32
    return %arg0, %c0_i32 : i32, i32
  }
  func.func @transform_1(%arg0: i32) -> (i32, i32) {
    %c0_i32 = arith.constant 0 : i32
    %c0_i32_0 = arith.constant 0 : i32
    %c0_i32_1 = arith.constant 0 : i32
    return %c0_i32, %c0_i32_0 : i32, i32
  }
  func.func @transform_2(%arg0: i32) -> (i32, i32) {
    %c0_i32 = arith.constant 0 : i32
    %c0_i32_0 = arith.constant 0 : i32
    %c0_i32_1 = arith.constant 0 : i32
    return %c0_i32, %c0_i32_0 : i32, i32
  }
  func.func @transform_3(%arg0: i32) -> (i32, i32) {
    %c0_i32 = arith.constant 0 : i32
    %c0_i32_0 = arith.constant 0 : i32
    %c0_i32_1 = arith.constant 0 : i32
    return %c0_i32, %c0_i32_0 : i32, i32
  }
  func.func @transform_4(%arg0: i32) -> (i32, i32) {
    %c0_i32 = arith.constant 0 : i32
    %c0_i32_0 = arith.constant 0 : i32
    %c0_i32_1 = arith.constant 0 : i32
    return %c0_i32, %c0_i32_0 : i32, i32
  }
  func.func @transform_5(%arg0: i32) -> (i32, i32) {
    %c0_i32 = arith.constant 0 : i32
    %c0_i32_0 = arith.constant 0 : i32
    %c0_i32_1 = arith.constant 0 : i32
    return %c0_i32, %c0_i32_0 : i32, i32
  }
  func.func @transform_6(%arg0: i32) -> (i32, i32) {
    %c0_i32 = arith.constant 0 : i32
    %c0_i32_0 = arith.constant 0 : i32
    %c0_i32_1 = arith.constant 0 : i32
    return %c0_i32, %c0_i32_0 : i32, i32
  }
  func.func @transform_7(%arg0: i32) -> (i32, i32) {
    %c0_i32 = arith.constant 0 : i32
    %c0_i32_0 = arith.constant 0 : i32
    return %arg0, %c0_i32 : i32, i32
  }
}

</mosaic_0001>

<bundles_post_ra>
// kernel: tpu_custom_call.1
= control target key start
LH: loop header
LB: loop body
LE: loop exit
PB: predicated region body
PF: predicated region fallthrough
CT: control target
= control target key end

     0   :  { %12 = vsyncpa [#allocation3], 0  ;;  %s1468_s0 = inlined_call_operand.vmem [shape: f32[2,784], index: 0, kind: input, shape index: {}]   ;;  %s1469_s1 = inlined_call_operand.hbm [shape: bf16[784,128], index: 1, kind: input, shape index: {}]   ;;  %s1470_s2 = inlined_call_operand.vmem [shape: f32[1,128], index: 2, kind: input, shape index: {}]   ;;  %s1471_s3 = inlined_call_operand.vmem [shape: f32[128,64], index: 3, kind: input, shape index: {}]   ;;  %s1472_s4 = inlined_call_operand.vmem [shape: f32[1,64], index: 4, kind: input, shape index: {}]   ;;  %s1473_s5 = inlined_call_operand.vmem [shape: f32[64,10], index: 5, kind: input, shape index: {}]   ;;  %s1474_s6 = inlined_call_operand.vmem [shape: f32[1,10], index: 6, kind: input, shape index: {}]   ;;  %s1475_s7 = inlined_call_operand.hbm [shape: f32[2,10], index: 7, kind: output, shape index: {}]  }
   0x1   :  { %13 = vsyncpa [#allocation4], 0  ;;  %s1272_s24 = smov [#allocation2]   ;;  %s1224_s28 = scalar_lea.hbm %s1469_s1, 6272 }
   0x2   :  { %s21_s25 = sshll.u32 %s1272_s24, 4  ;;  %p1225_p0 = scmp.ne.s32.totalorder %s1469_s1, %s1224_s28  ;;  %s22_s25 = int_to_ptr.vmem [resolvable:$true] %s21_s25 }
   0x3   :  { %p1228_p1 = scmp.lt.u32.totalorder %s1224_s28, %s1469_s1 }
   0x5   :  { %p1230_p2 = pnand %p1228_p1, %p1225_p0 }
   0x7   :  { %1233 = shalt.err (!%p1230_p2)
}
   0x8   :  { %s1234_s10 = scalar_lea.vmem %s22_s25, 6272  ;;  %p1239_p4 = scmp.lt.s32.totalorder %s22_s25, %s22_s25 }
   0x9   :  { %p1235_p3 = scmp.ne.s32.totalorder %s22_s25, %s1234_s10  ;;  %p1240_p5 = scmp.lt.s32.totalorder %s1234_s10, %s1234_s10 }
   0xb   :  { %p1241_p6 = por %p1240_p5, %p1239_p4 }
   0xd   :  { %p1242_p7 = pnand %p1241_p6, %p1235_p3 }
   0xf   :  { %1245 = shalt.err (!%p1242_p7)
}
  0x10   :  { %s1273_s11 = smov 64   ;;  %s1274_s12 = smov 4  }
  0x11   :  { %27 = dma.hbm_to_vmem [thread:$0]  %s1469_s1, 6272, %s22_s25, [#allocation3], %s1273_s11, %s1273_s11, %s1274_s12  }
  0x12   :  { %1268 = dma.done.wait [#allocation3], 6272  }
  0x13   :  { %1269 = vsyncadd [#allocation3], 4294961024  ;;  %v1163_v0 = vld [vmem:[#allocation2 + $0x40] sm:$0xff]   ;;  %v1167_v4 = vld [vmem:[#allocation2 + $0x48] sm:$0xff]   ;;  %v1275_v23 = vmov 1983009808   ;;  %v65_v25 = vlaneseq }
  0x14   :  { %v1164_v1 = vld [vmem:[#allocation2] sm:$0xff]   ;;  %963 = vmatprep.subr.bf16.mxu0 %v1163_v0  ;;  %v1168_v5 = vld [vmem:[#allocation2 + $0x8] sm:$0xff]   ;;  %v1171_v8 = vld [vmem:[#allocation2 + $0x50] sm:$0xff]   ;;  %v63_v24 = vunpack.c.l.s4 %v1275_v23  ;;  %v1276_v47 = vmov 0.0   ;;  %vm1277_vm0 = vmmov 0   ;;  %vm542_vm1 = vcmask 130048  }
  0x15   :  { %v1165_v2 = vld [vmem:[#allocation2 + $0xc0] sm:$0xff]   ;;  %964 = vmatpush3.bf16.msra.mxu0 %v1164_v1  ;;  %v1169_v6 = vld [vmem:[#allocation2 + $0xc8] sm:$0xff]   ;;  %v1172_v9 = vld [vmem:[#allocation2 + $0x10] sm:$0xff]   ;;  %v66_v31 = vshrl.u32 %v65_v25, 7  ;;  %v1278_v25 = vmov 0.0|0.0   ;;  %vm816_vm2 = vcmask 523264  }
  0x16   :  { %v1166_v3 = vld [vmem:[#allocation2 + $0x80] sm:$0xff]   ;;  %985 = vmatprep.subr.bf16.mxu1 %v1165_v2  ;;  %965 = vmatprep.subr.bf16.mxu0 %v1167_v4  ;;  %v1170_v7 = vld [vmem:[#allocation2 + $0x88] sm:$0xff]   ;;  %v1173_v10 = vld [vmem:[#allocation2 + $0xd0] sm:$0xff]   ;;  %v64_v30 = vunpack.c.0.s8 %v63_v24  ;;  %vm890_vm3 = vcmask 80896  }
  0x17   :  { %986 = vmatpush3.bf16.msra.mxu1 %v1166_v3  ;;  %v1174_v11 = vld [vmem:[#allocation2 + $0x90] sm:$0xff]   ;;  %v1175_v12 = vld [vmem:[#allocation2 + $0x58] sm:$0xff]   ;;  %v1179_v16 = vld [vmem:[#allocation2 + $0x60] sm:$0xff]  }
  0x18   :  { %987 = vmatprep.subr.bf16.mxu1 %v1169_v6  ;;  %v1176_v13 = vld [vmem:[#allocation2 + $0x18] sm:$0xff]   ;;  %v1180_v17 = vld [vmem:[#allocation2 + $0x20] sm:$0xff]   ;;  %v1183_v20 = vld [vmem:[#allocation2 + $0x68] sm:$0xff]   ;;  %v1334_v36 = vsub.s32 %v64_v30, %v66_v31 }
  0x19   :  { %966 = vmatpush3.bf16.msra.mxu0 %v1168_v5  ;;  %v1177_v14 = vld [vmem:[#allocation2 + $0xd8] sm:$0xff]   ;;  %v1181_v18 = vld [vmem:[#allocation2 + $0xe0] sm:$0xff]   ;;  %v1184_v21 = vld [vmem:[#allocation2 + $0x28] sm:$0xff]  }
  0x1a   :  { %967 = vmatprep.subr.bf16.mxu0 %v1171_v8  ;;  %v1178_v15 = vld [vmem:[#allocation2 + $0x98] sm:$0xff]   ;;  %v1182_v19 = vld [vmem:[#allocation2 + $0xa0] sm:$0xff]   ;;  %v1185_v22 = vld [vmem:[#allocation2 + $0xe8] sm:$0xff]  }
  0x1b   :  { %988 = vmatpush3.bf16.msra.mxu1 %v1170_v7  ;;  %v1186_v26 = vld [vmem:[#allocation2 + $0xa8] sm:$0xff]   ;;  %v1187_v27 = vld [vmem:[#allocation2 + $0x70] sm:$0xff]   ;;  %v1191_v33 = vld [vmem:[#allocation2 + $0x78] sm:$0xff]  }
  0x1c   :  { %989 = vmatprep.subr.bf16.mxu1 %v1173_v10  ;;  %v1188_v28 = vld [vmem:[#allocation2 + $0x30] sm:$0xff]   ;;  %v1192_v34 = vld [vmem:[#allocation2 + $0x38] sm:$0xff]   ;;  %v1199_v42 = vld [vmem:[#allocation2 + $0x140] sm:$0xff]  }
  0x1d   :  { %968 = vmatpush3.bf16.msra.mxu0 %v1172_v9  ;;  %v1189_v29 = vld [vmem:[#allocation2 + $0xf0] sm:$0xff]   ;;  %v1193_v35 = vld [vmem:[#allocation2 + $0xf8] sm:$0xff]   ;;  %v1202_v52 = vld [vmem:[#allocation2 + $0x100] sm:$0xff]  }
  0x1e   :  { %969 = vmatprep.subr.bf16.mxu0 %v1175_v12  ;;  %v1190_v32 = vld [vmem:[#allocation2 + $0xb0] sm:$0xff]   ;;  %v1196_v38 = vld [vmem:[%s1468_s0 + $0x1c] ss:$14 sps:$4 sm:$0xff]   ;;  %v1209_v63 = vld [vmem:[#allocation2 + $0x160] sm:$0xff]  }
  0x1f   :  { %990 = vmatpush3.bf16.msra.mxu1 %v1174_v11  ;;  %v1194_v37 = vld [vmem:[%s1468_s0] ss:$14 sps:$4 sm:$0xff]   ;;  %v1198_v39 = vld [vmem:[#allocation2 + $0xb8] sm:$0xff]   ;;  %v82_v41 = vrot.slane %v1196_v38, %v1334_v36  ;;  %v1200_v43 = vld [vmem:[%s1468_s0 + $0x4] ss:$14 sps:$4 sm:$0xff]  }
  0x20   :  { %991 = vmatprep.subr.bf16.mxu1 %v1177_v14  ;;  %v68_v40 = vrot.slane %v1194_v37, %v1334_v36  ;;  %v1201_v44 = vld [vmem:[%s1468_s0 + $0x20] ss:$14 sps:$4 sm:$0xff]   ;;  %v75_v48 = vrot.slane %v1200_v43, %v1334_v36  ;;  %v1207_v61 = vld [vmem:[#allocation2 + $0x158] sm:$0xff]   ;;  %v1221_v4 = vld [vmem:[%s1468_s0 + $0x24] ss:$14 sps:$4 sm:$0xff]  }
  0x21   :  { %970 = vmatpush3.bf16.msra.mxu0 %v1176_v13  ;;  %v89_v49 = vrot.slane %v1201_v44, %v1334_v36  ;;  %v1203_v55 = vld [vmem:[#allocation2 + $0x148] sm:$0xff]   ;;  %v1205_v59 = vld [vmem:[#allocation2 + $0x150] sm:$0xff]   ;;  %v1208_v62 = vld [vmem:[#allocation2 + $0x118] sm:$0xff]   ;;  %v118_v9 = vrot.slane %v1221_v4, %v1334_v36 }
  0x22   :  { %971 = vmatprep.subr.bf16.mxu0 %v1179_v16  ;;  %v91_v45 = vcombine.high %v68_v40, %v82_v41  ;;  %v90_v46 = vcombine.low %v68_v40, %v82_v41  ;;  %v1204_v58 = vld [vmem:[#allocation2 + $0x108] sm:$0xff]   ;;  %v1206_v60 = vld [vmem:[#allocation2 + $0x110] sm:$0xff]   ;;  %v1217_v0 = vld [vmem:[#allocation2 + $0x180] sm:$0xff]  }
  0x23   :  { %992 = vmatpush3.bf16.msra.mxu1 %v1178_v15  ;;  %v93_v53 = vcombine.high %v75_v48, %v89_v49  ;;  %v92_v54 = vcombine.low %v75_v48, %v89_v49  ;;  %v1218_v1 = vld [vmem:[%s1468_s0 + $0x8] ss:$14 sps:$4 sm:$0xff]   ;;  %v1220_v2 = vld [vmem:[%s1468_s0 + $0xc] ss:$14 sps:$4 sm:$0x33]   ;;  %v1210_v3 = vld [vmem:[#allocation2 + $0x120] sm:$0xff]  }
  0x24   :  { %993 = vmatprep.subr.bf16.mxu1 %v1181_v18  ;;  %v137_v50 = vpack.c.bf16 %v91_v45, %v91_v45  ;;  %v136_v51 = vpack.c.bf16 %v90_v46, %v90_v46  ;;  %v1223_v5 = vld [vmem:[%s1468_s0 + $0x28] ss:$14 sps:$4 sm:$0x33]   ;;  %v104_v7 = vrot.slane %v1218_v1, %v1334_v36  ;;  %v111_v8 = vrot.slane %v1220_v2, %v1334_v36  ;;  %v1215_v18 = vld [vmem:[#allocation2 + $0x178] sm:$0xff]   ;;  %v719_v41 = vld [vmem:[%s1471_s3 + $0x60] sm:$0xff] }
  0x25   :  { %972 = vmatpush3.bf16.msra.mxu0 %v1180_v17  ;;  %v139_v56 = vpack.c.bf16 %v93_v53, %v93_v53  ;;  %v138_v57 = vpack.c.bf16 %v92_v54, %v92_v54  ;;  %v1211_v6 = vld [vmem:[#allocation2 + $0x168] sm:$0xff]   ;;  %v125_v10 = vrot.slane %v1223_v5, %v1334_v36  ;;  %v1213_v14 = vld [vmem:[#allocation2 + $0x170] sm:$0xff]   ;;  %v722_v45 = vld [vmem:[%s1471_s3 + $0x78] sm:$0xff] }
  0x26   :  { %973 = vmatprep.subr.bf16.mxu0 %v1183_v20  ;;  %578 = vmatprep.mubr.bf16.mxu0 %v137_v50  ;;  %v1212_v11 = vld [vmem:[#allocation2 + $0x128] sm:$0xff]   ;;  %v127_v12 = vcombine.high %v104_v7, %v118_v9  ;;  %v1214_v17 = vld [vmem:[#allocation2 + $0x130] sm:$0xff]   ;;  %v1216_v20 = vld [vmem:[#allocation2 + $0x138] sm:$0xff]  }
  0x27   :  { %994 = vmatpush3.bf16.msra.mxu1 %v1182_v19  ;;  %618 = vmatprep.mubr.bf16.mxu1 %v139_v56  ;;  %v128_v13 = vcombine.low %v111_v8, %v125_v10  ;;  %v126_v19 = vcombine.low %v104_v7, %v118_v9  ;;  %v708_v23 = vld [vmem:[%s1471_s3 + $0x8] sm:$0xff]  ;;  %v709_v24 = vld [vmem:[%s1471_s3 + $0x10] sm:$0xff]  ;;  %v805_v53 = vld [vmem:[%s1473_s5 + $0x20] sm:$0xff] }
  0x28   :  { %995 = vmatprep.subr.bf16.mxu1 %v1185_v22  ;;  %v141_v15 = vpack.c.bf16 %v127_v12, %v127_v12  ;;  %v707_v22 = vld [vmem:[%s1471_s3] sm:$0xff]  ;;  %v712_v30 = vld [vmem:[%s1471_s3 + $0x28] sm:$0xff]  ;;  %v717_v38 = vld [vmem:[%s1471_s3 + $0x50] sm:$0xff] }
  0x29   :  { %974 = vmatpush3.bf16.msra.mxu0 %v1184_v21  ;;  %v142_v16 = vpack.c.bf16 %v128_v13, %v128_v13  ;;  %v140_v21 = vpack.c.bf16 %v126_v19, %v126_v19  ;;  %v716_v36 = vld [vmem:[%s1471_s3 + $0x48] sm:$0xff]  ;;  %v721_v44 = vld [vmem:[%s1471_s3 + $0x70] sm:$0xff] }
  0x2a   :  { %975 = vmatprep.subr.bf16.mxu0 %v1187_v27  ;;  %v710_v27 = vld [vmem:[%s1471_s3 + $0x18] sm:$0xff]  ;;  %v1139_v46 = vpack.c.bf16 %v722_v45, %v721_v44  ;;  %v802_v48 = vld [vmem:[%s1473_s5 + $0x8] sm:$0xff]  ;;  %v803_v49 = vld [vmem:[%s1473_s5 + $0x10] sm:$0xff] }
  0x2b   :  { %996 = vmatpush3.bf16.msra.mxu1 %v1186_v26  ;;  %v1118_v26 = vpack.c.bf16 %v708_v23, %v707_v22  ;;  %v806_v54 = vld [vmem:[%s1473_s5 + $0x28] sm:$0xff] }
  0x2c   :  { %997 = vmatprep.subr.bf16.mxu1 %v1189_v29  ;;  %v711_v29 = vld [vmem:[%s1471_s3 + $0x20] sm:$0xff] }
  0x2d   :  { %976 = vmatpush3.bf16.msra.mxu0 %v1188_v28  ;;  %v1121_v28 = vpack.c.bf16 %v710_v27, %v709_v24  ;;  %v1124_v31 = vpack.c.bf16 %v712_v30, %v711_v29 }
  0x2e   :  { %977 = vmatprep.subr.bf16.mxu0 %v1191_v33  ;;  %v714_v33 = vld [vmem:[%s1471_s3 + $0x38] sm:$0xff] }
  0x2f   :  { %998 = vmatpush3.bf16.msra.mxu1 %v1190_v32  ;;  %v713_v32 = vld [vmem:[%s1471_s3 + $0x30] sm:$0xff] }
  0x30   :  { %999 = vmatprep.subr.bf16.mxu1 %v1193_v35  ;;  %v715_v35 = vld [vmem:[%s1471_s3 + $0x40] sm:$0xff] }
  0x31   :  { %978 = vmatpush3.bf16.msra.mxu0 %v1192_v34  ;;  %v1127_v34 = vpack.c.bf16 %v714_v33, %v713_v32  ;;  %v1130_v37 = vpack.c.bf16 %v716_v36, %v715_v35 }
  0x32   :  { %1007 = vmatprep.subr.bf16.mxu0 %v1199_v42  ;;  %v720_v42 = vld [vmem:[%s1471_s3 + $0x68] sm:$0xff] }
  0x33   :  { %1000 = vmatpush3.bf16.msra.mxu1 %v1198_v39  ;;  %v718_v39 = vld [vmem:[%s1471_s3 + $0x58] sm:$0xff]  ;;  %v1136_v43 = vpack.c.bf16 %v720_v42, %v719_v41 }
  0x34   :  { %1057 = vmatprep.subr.bf16.mxu1 %v1276_v47  ;;  %579 = vmatmul.mubr.bf16.vlgmr.msra.gmra.mrb[0].mxu0 %v136_v51  ;;  %v1133_v40 = vpack.c.bf16 %v718_v39, %v717_v38  ;;  %v804_v51 = vld [vmem:[%s1473_s5 + $0x18] sm:$0xff] }
  0x35   :  { %1008 = vmatpush3.bf16.msra.mxu0 %v1202_v52  ;;  %658 = vmatprep.mubr.bf16.mxu0 %v141_v15  ;;  %v1145_v52 = vpack.c.bf16 %v804_v51, %v803_v49 }
  0x36   :  { %1009 = vmatprep.subr.bf16.mxu0 %v1203_v55  ;;  %619 = vmatmul.mubr.bf16.vlgmr.msra.gmra.mrb[0].mxu1 %v138_v57  ;;  %v1148_v55 = vpack.c.bf16 %v806_v54, %v805_v53  ;;  %v909_v57 = vld [vmem:[%s1470_s2] ss:$0 sm:$0xff] }
  0x37   :  { %1059 = vmatprep.mubr.msk.bf16.mxu1 %vm1277_vm0, %v1276_v47  ;;  %1058 = vmatpush3.bf16.msra.mxu1 %v1217_v0 }
  0x38   :  { %1117 = vmatprep.subr.bf16.mxu1 %v1278_v25 }
  0x39   :  { %1010 = vmatpush3.bf16.msra.mxu0 %v1204_v58 }
  0x3a   :  { %1011 = vmatprep.subr.bf16.mxu0 %v1205_v59 }
  0x3d   :  { %1012 = vmatpush3.bf16.msra.mxu0 %v1206_v60 }
  0x3e   :  { %1013 = vmatprep.subr.bf16.mxu0 %v1207_v61  ;;  %1060 = vmatmul.mubr.msk.bf16.vlgmr.msra.gmra.mrb[4].mxu1 %vm542_vm1, %v142_v16 }
  0x3f   :  { %1095 = vmatprep.mubr.msk.f32.mxu1 %vm1277_vm0, %v1276_v47  ;;  %1119 = vmatpush3.bf16.msra.mxu1 %v1118_v26 }
  0x40   :  { %1120 = vmatprep.subr.bf16.mxu1 %v1278_v25 }
  0x41   :  { %1014 = vmatpush3.bf16.msra.mxu0 %v1208_v62 }
  0x42   :  { %1015 = vmatprep.subr.bf16.mxu0 %v1209_v63 }
  0x43   :  { %1122 = vmatpush3.bf16.msra.mxu1 %v1121_v28 }
  0x44   :  { %1123 = vmatprep.subr.bf16.mxu1 %v1278_v25 }
  0x45   :  { %1016 = vmatpush3.bf16.msra.mxu0 %v1210_v3 }
  0x46   :  { %1017 = vmatprep.subr.bf16.mxu0 %v1211_v6 }
  0x47   :  { %1125 = vmatpush3.bf16.msra.mxu1 %v1124_v31 }
  0x48   :  { %1126 = vmatprep.subr.bf16.mxu1 %v1278_v25 }
  0x49   :  { %1018 = vmatpush3.bf16.msra.mxu0 %v1212_v11 }
  0x4a   :  { %1019 = vmatprep.subr.bf16.mxu0 %v1213_v14 }
  0x4b   :  { %1128 = vmatpush3.bf16.msra.mxu1 %v1127_v34 }
  0x4c   :  { %1129 = vmatprep.subr.bf16.mxu1 %v1278_v25 }
  0x4d   :  { %1020 = vmatpush3.bf16.msra.mxu0 %v1214_v17  ;;  %v807_v17 = vld [vmem:[%s1473_s5 + $0x30] sm:$0xff] }
  0x4e   :  { %1021 = vmatprep.subr.bf16.mxu0 %v1215_v18  ;;  %v808_v18 = vld [vmem:[%s1473_s5 + $0x38] sm:$0xff] }
  0x4f   :  { %1131 = vmatpush3.bf16.msra.mxu1 %v1130_v37  ;;  %v1151_v19 = vpack.c.bf16 %v808_v18, %v807_v17 }
  0x50   :  { %1132 = vmatprep.subr.bf16.mxu1 %v1278_v25 }
  0x51   :  { %1022 = vmatpush3.bf16.msra.mxu0 %v1216_v20  ;;  %v960_v20 = vld [vmem:[%s1472_s4] ss:$0 sm:$0xff] }
  0x52   :  { %1141 = vmatprep.subr.bf16.mxu0 %v1278_v25 }
  0x53   :  { %1134 = vmatpush3.bf16.msra.mxu1 %v1133_v40 }
  0x54   :  { %659 = vmatmul.mubr.bf16.vlgmr.msra.gmra.mrb[4].mxu0 %v140_v21  ;;  %1135 = vmatprep.subr.bf16.mxu1 %v1278_v25 }
  0x55   :  { %1114 = vmatprep.mubr.msk.f32.mxu0 %vm1277_vm0, %v1276_v47  ;;  %v801_v47 = vld [vmem:[%s1473_s5] sm:$0xff] }
  0x56   :  { %v1142_v50 = vpack.c.bf16 %v802_v48, %v801_v47 }
  0x57   :  { %1137 = vmatpush3.bf16.msra.mxu1 %v1136_v43 }
  0x58   :  { %1138 = vmatprep.subr.bf16.mxu1 %v1278_v25  ;;  %1143 = vmatpush3.bf16.msra.mxu0 %v1142_v50 }
  0x59   :  { %1144 = vmatprep.subr.bf16.mxu0 %v1278_v25 }
  0x5b   :  { %1140 = vmatpush3.bf16.msra.mxu1 %v1139_v46 }
  0x5c   :  { %1146 = vmatpush3.bf16.msra.mxu0 %v1145_v52 }
  0x5d   :  { %1147 = vmatprep.subr.bf16.mxu0 %v1278_v25 }
  0x60   :  { %1149 = vmatpush3.bf16.msra.mxu0 %v1148_v55 }
  0x61   :  { %1150 = vmatprep.subr.bf16.mxu0 %v1278_v25  ;;  %v961_v25 = vld [vmem:[%s1474_s6] ss:$0 sm:$0xff] }
  0x64   :  { %1152 = vmatpush3.bf16.msra.mxu0 %v1151_v19 }
 0x107   :  { %v979_v56 = vpop.f32.mrb[0].mxu0 }
 0x108   :  { %v980_v58 = vpop.f32.mrb[1].mxu0 }
 0x109   :  { %v981_v59 = vadd.f32 %v980_v58, %v979_v56  ;;  %v982_v60 = vpop.f32.mrb[2].mxu0  ;;  %v1001_v61 = vpop.f32.mrb[0].mxu1 }
 0x10a   :  { %v983_v62 = vpop.f32.mrb[3].mxu0  ;;  %v1002_v0 = vpop.f32.mrb[1].mxu1 }
 0x10b   :  { %v581_v63 = vadd.f32 %v981_v59, %v909_v57  ;;  %v1003_v1 = vadd.f32 %v1002_v0, %v1001_v61  ;;  %v1004_v2 = vpop.f32.mrb[2].mxu1 }
 0x10c   :  { %v1005_v3 = vpop.f32.mrb[3].mxu1 }
 0x10d   :  { %v621_v4 = vadd.f32 %v1003_v1, %v581_v63 }
 0x111   :  { %v700_v5 = vpop.f32.mrb[4].mxu1 }
 0x112   :  { %v1061_v6 = vpop.f32.mrb[5].mxu1 }
 0x113   :  { %v703_v7 = vpop.f32.mrb[6].mxu1 }
 0x114   :  { %v1062_v8 = vpop.f32.mrb[7].mxu1 }
 0x127   :  { %v1023_v9 = vpop.f32.mrb[4].mxu0 }
 0x128   :  { %v1024_v10 = vpop.f32.mrb[5].mxu0 }
 0x129   :  { %v1025_v11 = vadd.f32 %v1024_v10, %v1023_v9  ;;  %v1026_v12 = vpop.f32.mrb[6].mxu0 }
 0x12a   :  { %v1027_v13 = vpop.f32.mrb[7].mxu0 }
 0x12b   :  { %v661_v14 = vadd.f32 %v1025_v11, %v621_v4 }
 0x12d   :  { %v701_v15 = vadd.f32 %v700_v5, %v661_v14 }
 0x12f   :  { %v706_v16 = vmax.f32 %v701_v15, 0.0 }
 0x131   :  { %1096 = vmatmul.mubr.f32.vlgmr.msra.gmra.mrb[8].mxu1 %v706_v16 }
 0x204   :  { %v796_v21 = vpop.f32.mrb[8].mxu1 }
 0x205   :  { %v797_v22 = vadd.f32 %v960_v20, %v796_v21  ;;  %v1097_v23 = vpop.f32.mrb[9].mxu1 }
 0x207   :  { %v800_v24 = vmax.f32 %v797_v22, 0.0 }
 0x209   :  { %1115 = vmatmul.mubr.msk.f32.vlgmr.msra.gmra.mrb[8].mxu0 %vm816_vm2, %v800_v24 }
 0x2dc   :  { %v886_v26 = vpop.f32.mrb[8].mxu0 }
 0x2dd   :  { %v887_v27 = vadd.f32 %v961_v25, %v886_v26  ;;  %v1116_v28 = vpop.f32.mrb[9].mxu0 }
 0x2df   :  { %891 = vst.msk [vmem:[#allocation5] sm:$0xff] %vm890_vm3, %v887_v27 }
 0x2e0   :  { %896 = vsyncadd [#allocation4], 96  ;;  %s1279_s5 = smov [#allocation5]  }
 0x2e1   :  { %s897_s8 = sshll.u32 %s1279_s5, 4  ;;  %s898_s8 = int_to_ptr.vmem [resolvable:$true] %s897_s8 }
 0x2e2   :  { %s1246_s4 = scalar_lea.vmem %s898_s8, 32  ;;  %s1250_s9 = scalar_lea.vmem %s898_s8, 128 }
 0x2e3   :  { %p1247_p8 = scmp.ne.s32.totalorder %s898_s8, %s1246_s4  ;;  %p1251_p9 = scmp.lt.s32.totalorder %s898_s8, %s898_s8 }
 0x2e4   :  { %p1252_p10 = scmp.lt.s32.totalorder %s1250_s9, %s1246_s4 }
 0x2e6   :  { %p1253_p11 = por %p1252_p10, %p1251_p9 }
 0x2e8   :  { %p1254_p12 = pnand %p1253_p11, %p1247_p8 }
 0x2ea   :  { %1257 = shalt.err (!%p1254_p12)
}
 0x2eb   :  { %s1258_s6 = scalar_lea.hbm %s1475_s7, 32 }
 0x2ec   :  { %p1259_p13 = scmp.ne.s32.totalorder %s1475_s7, %s1258_s6  ;;  %p1262_p0 = scmp.lt.u32.totalorder %s1258_s6, %s1475_s7 }
 0x2ee   :  { %p1264_p1 = pnand %p1262_p0, %p1259_p13 }
 0x2f0   :  { %1267 = shalt.err (!%p1264_p1)
}
 0x2f1   :  { %s1280_s15 = smov 32   ;;  %s1281_s16 = smov 2  }
 0x2f2   :  { %903 = dma.vmem_to_hbm [thread:$0]  %s898_s8, 32, %s1475_s7, [#allocation4], %s1280_s15, %s1280_s15, %s1281_s16  }
 0x2f3   :  { %1270 = dma.done.wait [#allocation4], 128  }
 0x2f4   :  { %1271 = vsyncadd [#allocation4], 4294967168 }
 0x2f5   :  { %907 = vsyncpa [#allocation3], 1 }
 0x2f6   :  { %908 = vsyncpa [#allocation4], 1 }

</bundles_post_ra>
